<compile_context>
chip_gen: v6e
topology: v6e:2x2x1
jax: 0.10.0
libtpu: 0.0.40
codegen_flags: <defaults>
</compile_context>

<pallas_src>
import functools

import jax
import jax.numpy as jnp
from jax.experimental import pallas as pl
from jax.experimental.pallas import tpu as pltpu


_LANES = 128
_MAX_SUBLANE_TILE = 32          # spatial tile cap: 32 * 128 = 4096 lanes / step
_TARGET_BLOCK_BYTES = 8 << 20   # per-step input DMA target (upper cap)


def _cdiv(a, b):
    return -(-a // b)


def _round_up(x, m):
    return _cdiv(x, m) * m


def _vmem_capacity_bytes():
    try:
        return int(pltpu.get_tpu_info().vmem_capacity_bytes)
    except Exception:
        return 64 << 20   # v7x-sized conservative fallback


# ----------------------------- kernels --------------------------------------


def _sum_single_step_kernel(x_ref, o_ref, *, acc_dtype):
    # x_ref: (bn, C, t_sub, 128)   o_ref: (bn, t_sub, 128)
    # Channel axis (1) sits outside (sublane, lane) -> plain VPU adds; upcast
    # fuses into the reduction (bf16-safe), final cast back to out dtype.
    o_ref[...] = jnp.sum(x_ref[...], axis=1, dtype=acc_dtype).astype(o_ref.dtype)


def _sum_inplace_kernel(x_ref, o_ref, *, t_c, c_total, mask_tail):
    # Multi-step path where o_ref.dtype == accumulation dtype: accumulate
    # straight into the resident output block (same block index across k),
    # no VMEM scratch needed.
    k = pl.program_id(2)

    @pl.when(k == 0)
    def _():
        o_ref[...] = jnp.zeros_like(o_ref)

    x = x_ref[...]
    if mask_tail:  # static python flag: only emitted when C % t_c != 0
        ch = jax.lax.broadcasted_iota(jnp.int32, x.shape, 1)
        x = jnp.where(ch + k * t_c < c_total, x, jnp.zeros_like(x))
    o_ref[...] += jnp.sum(x, axis=1, dtype=o_ref.dtype)


def _sum_scratch_kernel(x_ref, o_ref, acc_ref, *, t_c, c_total, mask_tail):
    # Multi-step path for dtypes that need a wider accumulator (e.g. bf16 in).
    k = pl.program_id(2)

    @pl.when(k == 0)
    def _():
        acc_ref[...] = jnp.zeros_like(acc_ref)

    x = x_ref[...]
    if mask_tail:
        ch = jax.lax.broadcasted_iota(jnp.int32, x.shape, 1)
        x = jnp.where(ch + k * t_c < c_total, x, jnp.zeros_like(x))
    acc_ref[...] += jnp.sum(x, axis=1, dtype=acc_ref.dtype)

    @pl.when(k == pl.num_programs(2) - 1)
    def _():
        o_ref[...] = acc_ref[...].astype(o_ref.dtype)


# ----------------------------- wrapper ---------------------------------------


def calc_output(x):
    """Pallas equivalent of torch.sum(x, 1) for x of shape (N, C, *spatial)."""
    n, c = int(x.shape[0]), int(x.shape[1])
    rest = tuple(int(d) for d in x.shape[2:])
    hw = 1
    for d in rest:
        hw *= d

    out_dtype = x.dtype
    if jnp.issubdtype(x.dtype, jnp.floating):
        acc_dtype = jnp.float32
    elif jnp.issubdtype(x.dtype, jnp.integer):
        acc_dtype = jnp.int32
    else:
        acc_dtype = x.dtype
    itemsize = jnp.dtype(x.dtype).itemsize
    out_itemsize = jnp.dtype(out_dtype).itemsize

    # Lane-dense view: all trailing dims collapse onto the lane axis (free
    # reshape for contiguous NC* layout).
    x2 = x.reshape(n, c, hw)

    # Only the ragged-spatial case pays for a pad copy; channels are never
    # padded (the ragged channel tail is masked in-kernel instead).
    hw_pad = max(_LANES, _round_up(hw, _LANES))
    if hw_pad != hw:
        x2 = jnp.pad(x2, ((0, 0), (0, 0), (0, hw_pad - hw)))
    hw_sub = hw_pad // _LANES

    vmem_cap = _vmem_capacity_bytes()
    budget = min(_TARGET_BLOCK_BYTES, max(vmem_cap // 8, 1 << 20))

    # ---- tile selection -----------------------------------------------------
    # Spatial tile (sublane groups of 128 lanes): full extent when small,
    # otherwise a multiple of 8 (sublane granularity); ragged spatial edges are
    # harmless (garbage lanes only feed discarded output lanes).
    t_sub = hw_sub if hw_sub <= _MAX_SUBLANE_TILE else _MAX_SUBLANE_TILE
    row_bytes = t_sub * _LANES * itemsize          # bytes per channel per step

    # Channel (reduction) tile: sized from the byte budget, evened out over the
    # cdiv steps so the last step is not pathologically small.
    t_c = max(1, min(c, budget // max(row_bytes, 1)))
    kc = _cdiv(c, t_c)
    t_c = _cdiv(c, kc)
    kc = _cdiv(c, t_c)
    mask_tail = (c % t_c) != 0

    # Batch blocking: when the whole (C, spatial-tile) slab is small, block
    # several batch rows per step so per-step DMAs stay near the budget.
    bn = 1
    if kc == 1:
        per_sample = c * row_bytes
        bn = max(1, min(n, budget // max(per_sample, 1)))

    # Keep >= 2 "parallel" grid points when the shape allows (v7x: 2 TCs).
    if _cdiv(n, bn) * _cdiv(hw_sub, t_sub) == 1:
        if n >= 2:
            bn = _cdiv(n, 2)
        elif hw_sub >= 16:
            t_sub = _round_up(_cdiv(hw_sub, 2), 8)

    n_blocks = _cdiv(n, bn)
    hw_blocks = _cdiv(hw_sub, t_sub)

    # 4-D view: channel (reduction) axis outside (sublane, lane).
    x4 = x2.reshape(n, c, hw_sub, _LANES)
    out_shape = jax.ShapeDtypeStruct((n, hw_sub, _LANES), out_dtype)

    in_block = (bn, t_c, t_sub, _LANES)
    out_block = (bn, t_sub, _LANES)

    use_scratch = False
    if kc == 1:
        grid = (n_blocks, hw_blocks)
        kernel = functools.partial(_sum_single_step_kernel, acc_dtype=acc_dtype)
        in_index = lambda i, j: (i, 0, j, 0)
        out_index = lambda i, j: (i, j, 0)
        scratch_shapes = ()
        dim_sem = ("parallel", "parallel")
    else:
        grid = (n_blocks, hw_blocks, kc)
        in_index = lambda i, j, k: (i, k, j, 0)
        out_index = lambda i, j, k: (i, j, 0)
        dim_sem = ("parallel", "parallel", "arbitrary")
        if jnp.dtype(out_dtype) == jnp.dtype(acc_dtype):
            kernel = functools.partial(
                _sum_inplace_kernel, t_c=t_c, c_total=c, mask_tail=mask_tail)
            scratch_shapes = ()
        else:
            use_scratch = True
            kernel = functools.partial(
                _sum_scratch_kernel, t_c=t_c, c_total=c, mask_tail=mask_tail)
            scratch_shapes = (pltpu.VMEM(out_block, acc_dtype),)

    # Explicit scoped-VMEM limit: big enough for double-buffered blocks (also
    # on v5e's 16 MiB default), comfortably under every generation's physical
    # VMEM (v7x 64 MiB, v5e/v6e 128 MiB).
    in_bytes = bn * t_c * t_sub * _LANES * itemsize
    out_bytes = bn * t_sub * _LANES * out_itemsize
    scr_bytes = bn * t_sub * _LANES * jnp.dtype(acc_dtype).itemsize if use_scratch else 0
    need = 2 * in_bytes + 2 * out_bytes + scr_bytes
    vmem_limit = int(min(max(2 * need + (2 << 20), 32 << 20), (vmem_cap * 3) // 4))
    vmem_limit = int(max(vmem_limit, need + (2 << 20)))

    out = pl.pallas_call(
        kernel,
        out_shape=out_shape,
        grid_spec=pltpu.PrefetchScalarGridSpec(
            num_scalar_prefetch=0,
            grid=grid,
            in_specs=[pl.BlockSpec(in_block, in_index)],
            out_specs=pl.BlockSpec(out_block, out_index),
            scratch_shapes=scratch_shapes,
        ),
        compiler_params=pltpu.CompilerParams(
            dimension_semantics=dim_sem,
            vmem_limit_bytes=vmem_limit,
        ),
    )(x4)

    out = out.reshape(n, hw_pad)
    if hw_pad != hw:
        out = out[:, :hw]
    return out.reshape((n,) + rest)


if __name__ == "__main__":
    key = jax.random.PRNGKey(0)
    x = jax.random.normal(key, (2, 4, 16, 16), dtype=jnp.float32)

    out = calc_output(x)
    jax.block_until_ready(out)

    ref = jnp.sum(x, axis=1)
    assert out.shape == ref.shape == (2, 16, 16)
    assert jnp.allclose(out, ref, atol=1e-5, rtol=1e-5)

    print("KERNEL_OK")
</pallas_src>

<mosaic_0001>
module attributes {stable_mosaic.version = 11 : i64} {
  func.func @_sum_single_step_kernel(%arg0: i32, %arg1: i32, %arg2: memref<1x4x2x128xf32, #tpu.memory_space<vmem>>, %arg3: memref<1x2x128xf32, #tpu.memory_space<vmem>>) attributes {dimension_semantics = [#tpu.dimension_semantics<parallel>, #tpu.dimension_semantics<parallel>], iteration_bounds = array<i64: 2, 1>, scalar_prefetch = 0 : i64, scratch_operands = 0 : i64, tpu.core_type = #tpu.core_type<tc>, window_params = [{transform_indices = @transform_0, window_bounds = array<i64: 1, 4, 2, 128>}, {transform_indices = @transform_1, window_bounds = array<i64: 1, 2, 128>}]} {
    %c0 = arith.constant 0 : index
    %c0_0 = arith.constant 0 : index
    %c0_1 = arith.constant 0 : index
    %c0_2 = arith.constant 0 : index
    %0 = vector.load %arg2[%c0, %c0_0, %c0_1, %c0_2] : memref<1x4x2x128xf32, #tpu.memory_space<vmem>>, vector<1x4x2x128xf32>
    %cst = arith.constant dense<0.000000e+00> : vector<1x2x128xf32>
    %1 = vector.multi_reduction <add>, %0, %cst [1] : vector<1x4x2x128xf32> to vector<1x2x128xf32>
    %c0_3 = arith.constant 0 : index
    %c0_4 = arith.constant 0 : index
    %c0_5 = arith.constant 0 : index
    %2 = vector.load %arg3[%c0_3, %c0_4, %c0_5] : memref<1x2x128xf32, #tpu.memory_space<vmem>>, vector<1x2x128xf32>
    tpu.vector_store %arg3[%c0_3, %c0_4, %c0_5], %1 {strides = array<i32>} : memref<1x2x128xf32, #tpu.memory_space<vmem>>, vector<1x2x128xf32>,
    return
  }
  func.func @transform_0(%arg0: i32, %arg1: i32) -> (i32, i32, i32, i32) {
    %c0_i32 = arith.constant 0 : i32
    %c0_i32_0 = arith.constant 0 : i32
    %c0_i32_1 = arith.constant 0 : i32
    return %arg0, %c0_i32, %arg1, %c0_i32_0 : i32, i32, i32, i32
  }
  func.func @transform_1(%arg0: i32, %arg1: i32) -> (i32, i32, i32) {
    %c0_i32 = arith.constant 0 : i32
    %c0_i32_0 = arith.constant 0 : i32
    return %arg0, %arg1, %c0_i32 : i32, i32, i32
  }
}

</mosaic_0001>

<bundles_post_ra>
// kernel: tpu_custom_call.1
= control target key start
LH: loop header
LB: loop body
LE: loop exit
PB: predicated region body
PF: predicated region fallthrough
CT: control target
= control target key end

     0   :  { %6 = vsyncpa [#allocation3], 0  ;;  %s597_s0 = inlined_call_operand.hbm [shape: f32[2,4,2,128], index: 0, kind: input, shape index: {}]   ;;  %s598_s1 = inlined_call_operand.hbm [shape: f32[2,2,128], index: 1, kind: output, shape index: {}]  }
   0x1   :  { %8 = vsyncpa [#allocation3 + $0x1], 0 }
   0x2   :  { %9 = vsyncpa [#allocation4], 0 }
   0x3   :  { %11 = vsyncpa [#allocation4 + $0x1], 0  ;;  %s464_s6 = smov 0   ;;  %s466_s7 = smov 0  }
   0x4   :  { %s468_s8 = smov 0   ;;  %s470_s9 = smov 0  }
   0x5   :  { %s472_s10 = smov 0   ;;  %s474_s11 = smov 0  }
   0x6 LB: > { %s261_s12 = sadd.s32 4294967295, %s448_s11   ;;  %s262_s13 = sadd.s32 4294967294, %s448_s11   ;;  %s448_s11 = sphi %s474_s11, %s17_s11   ;;  %s444_s10 = sphi %s472_s10, %s609_s10   ;;  %s440_s9 = sphi %s470_s9, %s608_s9   ;;  %s436_s8 = sphi %s468_s8, %s607_s8   ;;  %s432_s7 = sphi %s466_s7, %s606_s7   ;;  %s428_s6 = sphi %s464_s6, %s605_s6  }
   0x7   : > { %s29_s14 = sadd.s32 1, %s444_s10  ;;  %s38_s15 = sadd.s32 1, %s436_s8 }
   0x8   : > { %p31_p0 = scmp.ge.s32.totalorder %s29_s14, 2  ;;  %p45_p1 = scmp.ne.s32.totalorder %s436_s8, %s432_s7 }
   0x9   : > { %p46_p2 = scmp.eq.s32.totalorder %s448_s11, 0  ;;  %p51_p3 = scmp.ne.s32.totalorder %s432_s7, %s428_s6 }
   0xa   : > { %s611_s14 = smov (%p31_p0, %s29_s14), 0  ;;  %p52_p5 = scmp.eq.s32.totalorder %s261_s12, 0 }
   0xb   : > { %p505_p4 = por %p46_p2, %p45_p1  ;;  %s33_s17 = ssub.s32 %s444_s10, %s611_s14 }
   0xc   : > { %p77_p6 = scmp.eq.s32.totalorder %s261_s12, 1  ;;  %p36_p7 = scmp.eq.s32.totalorder %s33_s17, 0 }
   0xd   : > { %p511_p8 = por %p52_p5, %p51_p3  ;;  %p83_p10 = scmp.eq.s32.totalorder %s262_s13, 1 }
   0xe   : > { %p515_p9 = por %p77_p6, %p45_p1  ;;  %p288_p13 = scmp.lt.s32.totalorder %s448_s11, 2 }
   0xf   : > { %s520_s20 = scalar_select %p36_p7, %s436_s8, %s38_s15  }
  0x10   : > { %p522_p11 = por %p83_p10, %p51_p3  ;;  %s103_s22 = sand.u32 1, %s436_s8  }
  0x11   : > { %s265_s23 = sshll.u32 %s103_s22, 3  ;;  %s275_s24 = sshll.u32 %s444_s10, 7 }
  0x12   : > { %s114_s27 = scalar_lea.hbm %s597_s0, %s275_s24  ;;  %s107_s28 = scalar_lea.vmem [#allocation2], %s265_s23 }
  0x13   : > { %s115_s29 = sshll.u32 %s107_s28, 4  ;;  %p535_p0 = pnand %p288_p13, %p505_p4  ;;  %s116_s29 = int_to_ptr.vmem [resolvable:$true] %s115_s29 }
  0x14   : > { %p268_p1 = scmp.ge.s32.totalorder %s448_s11, 1  ;;  %s104_s2 = scalar_lea.sflag [#allocation3], %s103_s22 }
  0x15   : > { %p342_p2 = pneg %p535_p0  ;;  %s353_s3 = scalar_lea.vmem %s116_s29, 128 }
  0x16   : > { %p354_p3 = scmp.ne.s32.totalorder %s116_s29, %s353_s3  ;;  %s450_s4 = smov [#allocation2]  }
  0x17   : > { %s358_s5 = sshll.u32 %s450_s4, 4  ;;  %s359_s5 = int_to_ptr.vmem [resolvable:$false] %s358_s5 }
  0x18   : > { %p356_p5 = pnand %p354_p3, %p342_p2  ;;  %s360_s12 = scalar_lea.vmem %s359_s5, 256 }
  0x19   : > { %p361_p7 = scmp.lt.s32.totalorder %s116_s29, %s359_s5  ;;  %p362_p10 = scmp.lt.s32.totalorder %s360_s12, %s353_s3 }
  0x1a   : > { %p357_p6 = pneg %p356_p5 }
  0x1b   : > { %p363_p12 = por %p362_p10, %p361_p7 }
  0x1d   : > { %p364_p4 = pnand %p363_p12, %p357_p6 }
  0x1f   : > { %367 = shalt.err (!%p364_p4)
}
  0x20   : > { %s451_s13 = smov 32   ;;  %s452_s15 = smov 2  }
  0x21   : > { %283 = dma.hbm_to_vmem [thread:$0]  (!%p535_p0), %s114_s27, 128, %s116_s29, %s104_s2, %s451_s13, %s451_s13, %s452_s15  }
  0x22   : > { %p123_p13 = scmp.lt.s32.totalorder %s448_s11, 3 }
  0x24   : > { %p124_p2 = pnand %p268_p1, %p123_p13 }
  0x25   : > { %s548_s16 = sand.u32 (!%p124_p2), 1, %s432_s7  }
  0x26   : > { %127 = sbr.rel (%p124_p2) target bundleno = 69 (0x45), region = 24  ;;  %s269_s17 = sshll.u32 (!%p124_p2), %s548_s16, 3 }
  0x27   : > { %s130_s22 = scalar_lea.sflag (!%p124_p2), [#allocation3], %s548_s16  ;;  %s133_s23 = scalar_lea.vmem (!%p124_p2), [#allocation2], %s269_s17 }
  0x2b   : > { %419 = dma.done.wait (%p511_p8), %s130_s22, 128  }
  0x2c   : > { %421 = vsyncadd (%p511_p8), %s130_s22, 4294967168  ;;  %s270_s24 = sshll.u32 %s548_s16, 1  ;;  %vm156_vm0 = vcmask 1041408   ;;  %v152_v0 = vld [vmem:[%s133_s23] sm:$0x3]  ;;  %s272_s27 = sshll.u32 %s440_s9, 5 }
  0x2d   : > { %v153_v1 = vld [vmem:[%s133_s23 + $0x2] sm:$0x3]  ;;  %v154_v2 = vld [vmem:[%s133_s23 + $0x4] sm:$0x3]  ;;  %v155_v3 = vld [vmem:[%s133_s23 + $0x6] sm:$0x3]  ;;  %s178_s29 = scalar_lea.hbm %s598_s1, %s272_s27 }
  0x2e   : > { %v157_v4 = vsel %vm156_vm0, %v152_v0, 0.0  ;;  %v158_v5 = vsel %vm156_vm0, %v153_v1, 0.0  ;;  %v160_v6 = vsel %vm156_vm0, %v154_v2, 0.0  ;;  %v162_v8 = vsel %vm156_vm0, %v155_v3, 0.0  ;;  %s151_s25 = scalar_lea.vmem [#allocation5], %s270_s24  ;;  %s166_s30 = scalar_lea.sflag [#allocation4], %s548_s16 }
  0x2f   : > { %v159_v7 = vadd.f32 %v158_v5, %v157_v4  ;;  %s180_s26 = sshll.u32 %s151_s25, 4  ;;  %s453_s3 = smov [#allocation5]   ;;  %s181_s26 = int_to_ptr.vmem [resolvable:$true] %s180_s26 }
  0x30   : > { %s368_s2 = scalar_lea.vmem %s181_s26, 32  ;;  %s372_s4 = sshll.u32 %s453_s3, 4  ;;  %s373_s4 = int_to_ptr.vmem [resolvable:$false] %s372_s4 }
  0x31   : > { %v161_v9 = vadd.f32 %v160_v6, %v159_v7  ;;  %p369_p8 = scmp.ne.s32.totalorder %s181_s26, %s368_s2  ;;  %s374_s5 = scalar_lea.vmem %s373_s4, 64 }
  0x32   : > { %p375_p1 = scmp.lt.s32.totalorder %s181_s26, %s373_s4  ;;  %p376_p3 = scmp.lt.s32.totalorder %s374_s5, %s368_s2 }
  0x33   : > { %v163_v10 = vadd.f32 %v162_v8, %v161_v9  ;;  %p370_p12 = pnand %p369_p8, %p515_p9 }
  0x34   : > { %p377_p5 = por %p376_p3, %p375_p1 }
  0x35   : > { %164 = vst [vmem:[%s151_s25] sm:$0x3] %v163_v10  ;;  %p371_p0 = pneg %p370_p12 }
  0x37   : > { %p378_p6 = pnand %p377_p5, %p371_p0 }
  0x39   : > { %381 = shalt.err (!%p378_p6)
}
  0x3a   : > { %s382_s9 = scalar_lea.hbm %s178_s29, 32  ;;  %s386_s15 = scalar_lea.hbm %s598_s1, 64 }
  0x3b   : > { %p383_p7 = scmp.ne.s32.totalorder %s178_s29, %s382_s9  ;;  %p387_p13 = scmp.lt.s32.totalorder %s178_s29, %s598_s1 }
  0x3c   : > { %p388_p2 = scmp.lt.s32.totalorder %s386_s15, %s382_s9 }
  0x3d   : > { %p384_p10 = pnand %p383_p7, %p515_p9 }
  0x3e   : > { %p389_p8 = por %p388_p2, %p387_p13 }
  0x3f   : > { %p385_p4 = pneg %p384_p10 }
  0x41   : > { %p390_p12 = pnand %p389_p8, %p385_p4 }
  0x43   : > { %393 = shalt.err (!%p390_p12)
}
  0x44   : > { %278 = dma.vmem_to_hbm [thread:$0]  (%p515_p9), %s181_s26, 32, %s178_s29, %s166_s30  }
  0x45 PF: > { %s192_s22 = sand.u32 1, %s428_s6   ;;  %p604_p0 = scmp.ge.s32.totalorder %s448_s11, 2 }
  0x46   : > { %s193_s23 = scalar_lea.sflag [#allocation4], %s192_s22 }
  0x47   : > { %p285_p1 = pnand %p604_p0, %p522_p11 }
  0x49   : > { %p286_p3 = pneg %p285_p1 }
  0x4b   : > { %423 = dma.done.wait (%p286_p3), %s193_s23, 32  }
  0x4c   : > { %425 = vsyncadd (%p286_p3), %s193_s23, 4294967264  ;;  %s17_s11 = sadd.s32 1, %s448_s11   ;;  %s605_s6 = smov %s432_s7 }
  0x4d   : > { %p14_p5 = scmp.ge.s32.totalorder %s17_s11, 4   ;;  %s606_s7 = smov %s436_s8 }
  0x4e   : > { %s607_s8 = smov %s520_s20  ;;  %s608_s9 = smov %s444_s10 }
  0x4f   : > { %s609_s10 = smov %s611_s14  ;;  %16 = sbr.rel (!%p14_p5) target bundleno = 6 (0x6), region = 69 }
  0x54   :  { %198 = vsyncpa [#allocation3], 1 }
  0x55   :  { %200 = vsyncpa [#allocation3 + $0x1], 1 }
  0x56   :  { %201 = vsyncpa [#allocation4], 1 }
  0x57   :  { %203 = vsyncpa [#allocation4 + $0x1], 1 }

</bundles_post_ra>
